<compile_context>
chip_gen: v6e
topology: v6e:2x2x1
jax: 0.10.0
libtpu: 0.0.40
codegen_flags: <defaults>
</compile_context>

<pallas_src>
import jax
import jax.numpy as jnp
from jax.experimental import pallas as pl
from jax.experimental.pallas import tpu as pltpu


def collabfnet_kernel(x_ref, w1_ref, b1_ref, w2_ref, b2_ref, o_ref):
    # relu(cat([U, V], dim=1)) == cat([relu(U), relu(V)], dim=1); done on the fused buffer.
    x = jnp.maximum(x_ref[...], 0)

    # TODO(synk): nn.Dropout(0.1) is identity in eval mode; training-mode dropout
    # (pltpu.prng_seed + pltpu.stateful_bernoulli mask, scaled by 1/0.9) not emitted here.

    # lin1 (single K = 2E matmul, bf16 inputs, f32 accumulate) + relu.
    h = jnp.dot(x, w1_ref[...], preferred_element_type=jnp.float32) + b1_ref[...]
    h = jnp.maximum(h, 0.0)

    # lin2: N=1 matmul replaced by VPU multiply + cross-lane reduce (keeps MXU free).
    o_ref[...] = jnp.sum(h * w2_ref[...], axis=-1, keepdims=True) + b2_ref[...]


def _batch_tile(B):
    """Pick a batch tile: full batch when small, else a large lane-friendly tile."""
    if B <= 1024:
        return B
    for tm in (1024, 512, 256, 128):
        if B % tm == 0:
            return tm
    return 1024  # non-divisible tail: Pallas pads/masks the last partial block


def collabfnet_forward(u_idx, v_idx, params):
    """u_idx, v_idx: int32 [B] indices. Returns float32 [B, 1]."""
    user_emb = params["user_emb"]   # [num_users, E] bf16
    item_emb = params["item_emb"]   # [num_items, E] bf16
    W1 = params["W1"]               # [2E, H]  bf16 (== torch lin1.weight.T)
    b1 = params["b1"]               # [1, H]   f32
    W2 = params["W2"]               # [H, 1]   f32  (== torch lin2.weight.T)
    b2 = params["b2"]               # [1, 1]   f32

    E = user_emb.shape[1]
    B = u_idx.shape[0]
    H = W1.shape[1]
    twoE = 2 * E

    # Pad hidden dim to a multiple of 128 lanes (zero columns / zero W2 rows are exact).
    Hp = ((H + 127) // 128) * 128
    pad = Hp - H
    W1p = jnp.pad(W1, ((0, 0), (0, pad)))            # [2E, Hp] bf16
    b1p = jnp.pad(b1, ((0, 0), (0, pad)))            # [1, Hp]  f32
    w2row = jnp.pad(W2.T, ((0, 0), (0, pad)))        # [1, Hp]  f32

    # Embedding gathers + concat (glue, plain JAX / XLA). bf16 halves gather traffic.
    U = jnp.take(user_emb, u_idx, axis=0)            # [B, E]  bf16
    V = jnp.take(item_emb, v_idx, axis=0)            # [B, E]  bf16
    X = jnp.concatenate([U, V], axis=1)              # [B, 2E] bf16

    TM = _batch_tile(B)
    grid = (pl.cdiv(B, TM),)

    out = pl.pallas_call(
        collabfnet_kernel,
        out_shape=jax.ShapeDtypeStruct((B, 1), jnp.float32),
        grid=grid,
        in_specs=[
            pl.BlockSpec((TM, twoE), lambda i: (i, 0)),   # X tiles stream over batch
            pl.BlockSpec((twoE, Hp), lambda i: (0, 0)),   # W1 resident in VMEM
            pl.BlockSpec((1, Hp), lambda i: (0, 0)),      # b1 resident
            pl.BlockSpec((1, Hp), lambda i: (0, 0)),      # w2 row resident
            pl.BlockSpec((1, 1), lambda i: (0, 0)),       # b2 resident
        ],
        out_specs=pl.BlockSpec((TM, 1), lambda i: (i, 0)),
        compiler_params=pltpu.CompilerParams(
            dimension_semantics=("parallel",),            # shard batch across TCs on v7x
            vmem_limit_bytes=32 << 20,                    # safe for v7x 64 MiB, v5e/v6e 128 MiB
        ),
    )(X, W1p, b1p, w2row, b2)
    return out


def init_params(key, num_users, num_items, emb_size, n_hidden):
    k = jax.random.split(key, 6)
    return {
        # memory-dominant tensors in bf16 (halves gather/weight HBM traffic)
        "user_emb": jax.random.normal(k[0], (num_users, emb_size), jnp.float32).astype(jnp.bfloat16),
        "item_emb": jax.random.normal(k[1], (num_items, emb_size), jnp.float32).astype(jnp.bfloat16),
        "W1": (0.1 * jax.random.normal(k[2], (2 * emb_size, n_hidden), jnp.float32)).astype(jnp.bfloat16),
        # small tensors stay f32
        "b1": 0.1 * jax.random.normal(k[3], (1, n_hidden), jnp.float32),
        "W2": 0.1 * jax.random.normal(k[4], (n_hidden, 1), jnp.float32),
        "b2": 0.1 * jax.random.normal(k[5], (1, 1), jnp.float32),
    }


def reference_forward(u_idx, v_idx, params):
    """Pure-JAX f32 reference mirroring the PyTorch forward (eval mode)."""
    U = jnp.take(params["user_emb"], u_idx, axis=0).astype(jnp.float32)
    V = jnp.take(params["item_emb"], v_idx, axis=0).astype(jnp.float32)
    x = jax.nn.relu(jnp.concatenate([U, V], axis=1))
    x = jax.nn.relu(
        jnp.dot(x, params["W1"].astype(jnp.float32),
                precision=jax.lax.Precision.HIGHEST) + params["b1"])
    return jnp.dot(x, params["W2"], precision=jax.lax.Precision.HIGHEST) + params["b2"]


if __name__ == "__main__":
    num_users, num_items = 16, 24
    emb_size, n_hidden = 32, 16
    batch = 8

    key = jax.random.PRNGKey(0)
    kp, ku, kv = jax.random.split(key, 3)
    params = init_params(kp, num_users, num_items, emb_size, n_hidden)

    u_idx = jax.random.randint(ku, (batch,), 0, num_users, dtype=jnp.int32)
    v_idx = jax.random.randint(kv, (batch,), 0, num_items, dtype=jnp.int32)

    fwd = jax.jit(collabfnet_forward)
    out = fwd(u_idx, v_idx, params)
    jax.block_until_ready(out)

    ref = reference_forward(u_idx, v_idx, params)
    assert out.shape == (batch, 1)
    assert jnp.allclose(out, ref, atol=1e-3, rtol=1e-3), (out, ref)

    print("KERNEL_OK")
</pallas_src>

<mosaic_0001>
module attributes {stable_mosaic.version = 11 : i64} {
  func.func @collabfnet_kernel(%arg0: i32, %arg1: memref<8x64xbf16, #tpu.memory_space<vmem>>, %arg2: memref<64x128xbf16, #tpu.memory_space<vmem>>, %arg3: memref<1x128xf32, #tpu.memory_space<vmem>>, %arg4: memref<1x128xf32, #tpu.memory_space<vmem>>, %arg5: memref<1x1xf32, #tpu.memory_space<vmem>>, %arg6: memref<8x1xf32, #tpu.memory_space<vmem>>) attributes {dimension_semantics = [#tpu.dimension_semantics<parallel>], iteration_bounds = array<i64: 1>, scalar_prefetch = 0 : i64, scratch_operands = 0 : i64, tpu.core_type = #tpu.core_type<tc>, window_params = [{transform_indices = @transform_0, window_bounds = array<i64: 8, 64>}, {pipeline_mode = #tpu.pipeline_mode<synchronous>, transform_indices = @transform_1, window_bounds = array<i64: 64, 128>}, {pipeline_mode = #tpu.pipeline_mode<synchronous>, transform_indices = @transform_2, window_bounds = array<i64: 1, 128>}, {pipeline_mode = #tpu.pipeline_mode<synchronous>, transform_indices = @transform_3, window_bounds = array<i64: 1, 128>}, {pipeline_mode = #tpu.pipeline_mode<synchronous>, transform_indices = @transform_4, window_bounds = array<i64: 1, 1>}, {transform_indices = @transform_5, window_bounds = array<i64: 8, 1>}]} {
    %c0 = arith.constant 0 : index
    %c0_0 = arith.constant 0 : index
    %0 = vector.load %arg1[%c0, %c0_0] : memref<8x64xbf16, #tpu.memory_space<vmem>>, vector<8x64xbf16>
    %cst = arith.constant 0.000000e+00 : bf16
    %1 = vector.broadcast %cst : bf16 to vector<8x64xbf16>
    %2 = arith.maximumf %0, %1 : vector<8x64xbf16>
    %c0_1 = arith.constant 0 : index
    %c0_2 = arith.constant 0 : index
    %3 = vector.load %arg2[%c0_1, %c0_2] : memref<64x128xbf16, #tpu.memory_space<vmem>>, vector<64x128xbf16>
    %cst_3 = arith.constant dense<0.000000e+00> : vector<8x128xf32>
    %4 = tpu.matmul %2, %3, %cst_3 {dimension_numbers = #tpu.dot_dimension_numbers<[1], [0], [0], [1], [0, 0, 1, 1], [], []>} : vector<8x64xbf16>, vector<64x128xbf16>, vector<8x128xf32> -> vector<8x128xf32>
    %c0_4 = arith.constant 0 : index
    %c0_5 = arith.constant 0 : index
    %5 = vector.load %arg3[%c0_4, %c0_5] : memref<1x128xf32, #tpu.memory_space<vmem>>, vector<1x128xf32>
    %6 = vector.broadcast %5 : vector<1x128xf32> to vector<8x128xf32>
    %7 = arith.addf %4, %6 : vector<8x128xf32>
    %cst_6 = arith.constant 0.000000e+00 : f32
    %8 = vector.broadcast %cst_6 : f32 to vector<8x128xf32>
    %9 = arith.maximumf %7, %8 : vector<8x128xf32>
    %c0_7 = arith.constant 0 : index
    %c0_8 = arith.constant 0 : index
    %10 = vector.load %arg4[%c0_7, %c0_8] : memref<1x128xf32, #tpu.memory_space<vmem>>, vector<1x128xf32>
    %11 = vector.broadcast %10 : vector<1x128xf32> to vector<8x128xf32>
    %12 = arith.mulf %9, %11 : vector<8x128xf32>
    %cst_9 = arith.constant dense<0.000000e+00> : vector<8xf32>
    %13 = vector.multi_reduction <add>, %12, %cst_9 [1] : vector<8x128xf32> to vector<8xf32>
    %14 = vector.shape_cast %13 : vector<8xf32> to vector<8x1xf32>
    %c0_10 = arith.constant 0 : index
    %c0_11 = arith.constant 0 : index
    %15 = vector.load %arg5[%c0_10, %c0_11] : memref<1x1xf32, #tpu.memory_space<vmem>>, vector<1x1xf32>
    %16 = vector.broadcast %15 : vector<1x1xf32> to vector<8x1xf32>
    %17 = arith.addf %14, %16 : vector<8x1xf32>
    %c0_12 = arith.constant 0 : index
    %c0_13 = arith.constant 0 : index
    %18 = vector.load %arg6[%c0_12, %c0_13] : memref<8x1xf32, #tpu.memory_space<vmem>>, vector<8x1xf32>
    tpu.vector_store %arg6[%c0_12, %c0_13], %17 {strides = array<i32>} : memref<8x1xf32, #tpu.memory_space<vmem>>, vector<8x1xf32>,
    return
  }
  func.func @transform_0(%arg0: i32) -> (i32, i32) {
    %c0_i32 = arith.constant 0 : i32
    %c0_i32_0 = arith.constant 0 : i32
    return %arg0, %c0_i32 : i32, i32
  }
  func.func @transform_1(%arg0: i32) -> (i32, i32) {
    %c0_i32 = arith.constant 0 : i32
    %c0_i32_0 = arith.constant 0 : i32
    %c0_i32_1 = arith.constant 0 : i32
    return %c0_i32, %c0_i32_0 : i32, i32
  }
  func.func @transform_2(%arg0: i32) -> (i32, i32) {
    %c0_i32 = arith.constant 0 : i32
    %c0_i32_0 = arith.constant 0 : i32
    %c0_i32_1 = arith.constant 0 : i32
    return %c0_i32, %c0_i32_0 : i32, i32
  }
  func.func @transform_3(%arg0: i32) -> (i32, i32) {
    %c0_i32 = arith.constant 0 : i32
    %c0_i32_0 = arith.constant 0 : i32
    %c0_i32_1 = arith.constant 0 : i32
    return %c0_i32, %c0_i32_0 : i32, i32
  }
  func.func @transform_4(%arg0: i32) -> (i32, i32) {
    %c0_i32 = arith.constant 0 : i32
    %c0_i32_0 = arith.constant 0 : i32
    %c0_i32_1 = arith.constant 0 : i32
    return %c0_i32, %c0_i32_0 : i32, i32
  }
  func.func @transform_5(%arg0: i32) -> (i32, i32) {
    %c0_i32 = arith.constant 0 : i32
    %c0_i32_0 = arith.constant 0 : i32
    return %arg0, %c0_i32 : i32, i32
  }
}

</mosaic_0001>

<bundles_post_ra>
// kernel: collabfnet_forward.1
= control target key start
LH: loop header
LB: loop body
LE: loop exit
PB: predicated region body
PF: predicated region fallthrough
CT: control target
= control target key end

     0   :  { %v165_v0 = vmov 0.0   ;;  %vm166_vm0 = vmmov 0   ;;  %v167_v6 = vmov 0   ;;  %vm64_vm1 = vcmask 523264   ;;  %s225_s1 = inlined_call_operand.vmem [shape: bf16[64,128], index: 1, kind: input, shape index: {}]   ;;  %s226_s0 = inlined_call_operand.vmem [shape: bf16[8,64], index: 0, kind: input, shape index: {}]   ;;  %s227_s4 = inlined_call_operand.<no memory space> [shape: f32[1,1], index: 4, kind: input, shape index: {}]   ;;  %s228_s2 = inlined_call_operand.vmem [shape: f32[1,128], index: 2, kind: input, shape index: {}]   ;;  %s229_s3 = inlined_call_operand.vmem [shape: f32[1,128], index: 3, kind: input, shape index: {}]   ;;  %s230_s5 = inlined_call_operand.vmem [shape: f32[8,1], index: 5, kind: output, shape index: {}]  }
   0x1   :  { %146 = vmatprep.subr.bf16.mxu0 %v165_v0  ;;  %v161_v1 = vld [vmem:[%s225_s1 + $0x18] sm:$0xff]   ;;  %154 = vmatprep.mubr.msk.bf16.mxu0 %vm166_vm0, %v165_v0  ;;  %v162_v2 = vld [vmem:[%s225_s1 + $0x10] sm:$0xff]   ;;  %v163_v3 = vld [vmem:[%s225_s1 + $0x8] sm:$0xff]   ;;  %v10_v8 = vstv %s227_s4  ;;  %vm127_vm2 = vcmask 7168  }
   0x2   :  { %147 = vmatpush3.bf16.msra.mxu0 %v161_v1  ;;  %v164_v4 = vld [vmem:[%s225_s1] sm:$0xff]   ;;  %11 = vst [vmem:[#allocation2] sm:$0x1] %v10_v8 }
   0x3   :  { %148 = vmatprep.subr.bf16.mxu0 %v165_v0  ;;  %v23_v5 = vld [vmem:[%s226_s0] sm:$0xf] }
   0x4   :  { %v24_v7 = vmax.bf16 %v167_v6, %v23_v5  ;;  %v133_v9 = vld [vmem:[%s228_s2] ss:$0 sm:$0xff] }
   0x5   :  { %v139_v13 = vld [vmem:[%s229_s3] ss:$0 sm:$0xff] }
   0x6   :  { %149 = vmatpush3.bf16.msra.mxu0 %v162_v2 }
   0x7   :  { %150 = vmatprep.subr.bf16.mxu0 %v165_v0 }
   0x9   :  { %v140_v18 = vld [vmem:[#allocation2] ss:$0 sm:$0xff] }
   0xa   :  { %151 = vmatpush3.bf16.msra.mxu0 %v163_v3 }
   0xb   :  { %152 = vmatprep.subr.bf16.mxu0 %v165_v0 }
   0xe   :  { %153 = vmatpush3.bf16.msra.mxu0 %v164_v4 }
  0x11   :  { %155 = vmatmul.mubr.msk.bf16.vlgmr.msra.gmra.mxu0 %vm64_vm1, %v24_v7 }
  0xd1   :  { %v102_v10 = vpop.f32.mrf.mxu0 }
  0xd2   :  { %v103_v11 = vadd.f32 %v133_v9, %v102_v10 }
  0xd3   :  { %v156_v12 = vpop.f32.mrf.mxu0 }
  0xd4   :  { %v108_v14 = vmax.f32 %v103_v11, 0.0 }
  0xd5   :  { %v105_v15 = vpop.f32.mrf.mxu0 }
  0xd6   :  { %v116_v16 = vmul.f32 %v139_v13, %v108_v14 }
  0xd7   :  { %v157_v17 = vpop.f32.mrf.mxu0 }
  0xd8   :  { %117 = vadd.xlane.f32.xlu0 %v116_v16 }
 0x161   :  { %v118_v19 = vpop.xlane.xlu0 %117 }
 0x162   :  { %v126_v20 = vadd.f32 %v140_v18, %v118_v19 }
 0x164   :  { %128 = vst.msk [vmem:[%s230_s5] sm:$0xff] %vm127_vm2, %v126_v20 }

</bundles_post_ra>
